<compile_context>
chip_gen: v6e
topology: v6e:2x2x1
jax: 0.10.0
libtpu: 0.0.40
codegen_flags: <defaults>
</compile_context>

<pallas_src>
import jax
import jax.numpy as jnp
from jax.experimental import pallas as pl
from jax.experimental.pallas import tpu as pltpu


def _round_up(x: int, m: int) -> int:
    return (x + m - 1) // m * m


# ---------------------------------------------------------------------------
# Path 1: tiled scores = embeds @ weight
# ---------------------------------------------------------------------------
def _score_kernel(emb_ref, w_ref, out_ref):
    # (TM, D) @ (D, C) on the MXU with fp32 accumulation.  C is narrow (masked
    # stores), which is fine: the HBM read of `embeds` is the bottleneck.
    out_ref[...] = jnp.dot(
        emb_ref[...], w_ref[...], preferred_element_type=jnp.float32
    ).astype(out_ref.dtype)


def supervised_graphsage_scores(
    embeds: jax.Array,
    weight: jax.Array,
    *,
    tile_rows: int = 4096,
    small_n_fallback_rows: int = 0,
) -> jax.Array:
    """scores = embeds.mm(weight); embeds [N, D], weight [D, C] -> [N, C].

    Set small_n_fallback_rows to ~512-1024 in production: for tiny batches a
    plain XLA dot beats the pallas_call launch/pipeline-prime overhead.  It is
    0 here so the demo actually exercises the kernel.
    """
    n, d = embeds.shape
    d_w, c = weight.shape
    assert d == d_w

    if n <= small_n_fallback_rows:
        return jnp.dot(
            embeds, weight, preferred_element_type=jnp.float32
        ).astype(embeds.dtype)

    # Respect the dtype of the data at rest: never cast the big (N, D) stream
    # in the wrapper.  Only the tiny (D, C) weight is converted if needed
    # (pre-cast it once in the module to skip even this).
    if weight.dtype != embeds.dtype:
        weight = weight.astype(embeds.dtype)

    # Row-tile alignment: 8 rows (fp32) / 16 rows (bf16 packs 2 rows/sublane).
    align = 16 if embeds.dtype == jnp.bfloat16 else 8
    tm = min(tile_rows, _round_up(n, align))
    # v7x has 2 TensorCores: prefer >= 2 row tiles so both stay fed.
    if n > align and pl.cdiv(n, tm) < 2:
        tm = _round_up(pl.cdiv(n, 2), align)

    # tm=4096 fp32 x D=128 is ~2 MiB per embeds tile (~4 MiB double-buffered):
    # well inside the default scoped-VMEM limit on every generation, including
    # v7x's 64 MiB physical VMEM, so vmem_limit_bytes stays at its default.
    grid = (pl.cdiv(n, tm),)

    return pl.pallas_call(
        _score_kernel,
        out_shape=jax.ShapeDtypeStruct((n, c), embeds.dtype),
        grid=grid,
        in_specs=[
            pl.BlockSpec((tm, d), lambda i: (i, 0)),   # streamed row tiles
            pl.BlockSpec((d, c), lambda i: (0, 0)),    # weight resident in VMEM
        ],
        out_specs=pl.BlockSpec((tm, c), lambda i: (i, 0)),
        compiler_params=pltpu.CompilerParams(
            # Row tiles are independent: shard across both TensorCores on v7x.
            dimension_semantics=("parallel",),
        ),
    )(embeds, weight)


# ---------------------------------------------------------------------------
# Path 2: fused encoder lookup (gather) + classifier matmul
# ---------------------------------------------------------------------------
_ISSUE_UNROLL = 8  # rows per issue-loop iteration (tm is a multiple of 8)


def _fused_gather_score_kernel(
    nodes_ref,    # SMEM (scalar prefetch): node ids, shape (N,)
    table_hbm,    # HBM (pl.ANY): embedding table, shape (total_nodes, D)
    w_ref,        # VMEM: weight block, shape (D, C)
    out_ref,      # VMEM: output block, shape (TM, C)
    emb_buf,      # VMEM scratch: gathered rows, shape (2, TM, D)
    sems,         # DMA semaphores, shape (2,) -- one per buffer slot
):
    tm = out_ref.shape[0]
    n_nodes = nodes_ref.shape[0]
    i = pl.program_id(0)
    n_tiles = pl.num_programs(0)

    def issue_tile(t, slot):
        base = t * tm

        @pl.loop(0, tm // _ISSUE_UNROLL)
        def _issue(j):
            r0 = j * _ISSUE_UNROLL
            for u in range(_ISSUE_UNROLL):      # static 8x unroll: descriptor
                r = r0 + u                      # builds interleave across rows
                # Clamp so the last (partial) tile never reads SMEM OOB; the
                # extra (repeated) rows land in the masked part of the output.
                idx = jnp.minimum(base + r, n_nodes - 1)
                row = nodes_ref[idx]
                pltpu.make_async_copy(
                    table_hbm.at[pl.ds(row, 1)],
                    emb_buf.at[slot, pl.ds(r, 1)],
                    sems.at[slot],              # all rows signal ONE semaphore
                ).start()

    # Prime the pipeline with tile 0 on the first grid step.
    @pl.when(i == 0)
    def _():
        issue_tile(0, 0)

    # Double buffer: issue tile i+1's gathers before consuming tile i.
    @pl.when(i + 1 < n_tiles)
    def _():
        issue_tile(i + 1, (i + 1) % 2)

    slot = i % 2
    # Single aggregated wait for all tm row copies of this tile: the dummy
    # descriptor only provides the destination ref / byte count (tm * D * 4B).
    pltpu.make_async_copy(
        emb_buf.at[slot], emb_buf.at[slot], sems.at[slot]
    ).wait()

    out_ref[...] = jnp.dot(
        emb_buf[slot], w_ref[...], preferred_element_type=jnp.float32
    ).astype(out_ref.dtype)


def supervised_graphsage_scores_fused(
    nodes: jax.Array,
    embedding_table: jax.Array,
    weight: jax.Array,
    *,
    tile_rows: int = 512,
) -> jax.Array:
    """scores = table[nodes] @ weight, without materializing embeds in HBM."""
    n = nodes.shape[0]
    total_nodes, d = embedding_table.shape
    d_w, c = weight.shape
    assert d == d_w

    if weight.dtype != embedding_table.dtype:
        weight = weight.astype(embedding_table.dtype)

    nodes = nodes.astype(jnp.int32)
    align = 16 if embedding_table.dtype == jnp.bfloat16 else 8
    tm = _round_up(min(tile_rows, _round_up(n, align)), _ISSUE_UNROLL)
    grid = (pl.cdiv(n, tm),)

    # TODO(synk): when the embedding table (or its hot shard) fits in VMEM
    # (<~40 MiB usable on v7x's 64 MiB, <~100 MiB on v5e/v6e), stage it
    # resident and gather with in-kernel reads instead of per-row DMAs.
    return pl.pallas_call(
        _fused_gather_score_kernel,
        out_shape=jax.ShapeDtypeStruct((n, c), embedding_table.dtype),
        grid_spec=pltpu.PrefetchScalarGridSpec(
            num_scalar_prefetch=1,                        # node ids -> SMEM
            grid=grid,
            in_specs=[
                pl.BlockSpec(memory_space=pl.ANY),        # table stays in HBM
                pl.BlockSpec((d, c), lambda i, nodes: (0, 0)),
            ],
            out_specs=pl.BlockSpec((tm, c), lambda i, nodes: (i, 0)),
            scratch_shapes=[
                pltpu.VMEM((2, tm, d), embedding_table.dtype),  # double buffer
                pltpu.SemaphoreType.DMA((2,)),                  # one sem/slot
            ],
        ),
        compiler_params=pltpu.CompilerParams(
            # The double buffer carries state across grid steps (prefetch of
            # tile i+1 at step i), so the axis must run sequentially.
            dimension_semantics=("arbitrary",),
        ),
    )(nodes, embedding_table, weight)


# ---------------------------------------------------------------------------
# Module
# ---------------------------------------------------------------------------
class SupervisedGraphSage:
    """JAX/Pallas port of the torch SupervisedGraphSage module (forward only)."""

    def __init__(self, num_classes: int, embed_dim: int, key):
        # init.xavier_uniform_(torch.FloatTensor(embed_dim, num_classes)):
        # bound = sqrt(6 / (fan_in + fan_out)).
        bound = (6.0 / (embed_dim + num_classes)) ** 0.5
        # If the encoder emits bf16-at-rest embeddings, pre-cast this weight
        # to bf16 here once instead of per forward call.
        self.weight = jax.random.uniform(
            key, (embed_dim, num_classes), dtype=jnp.float32,
            minval=-bound, maxval=bound,
        )
        self.embed_dim = embed_dim
        self.num_classes = num_classes

    def forward(self, embeds: jax.Array) -> jax.Array:
        # embeds = enc(nodes) is produced by the caller (encoder stand-in).
        return supervised_graphsage_scores(embeds, self.weight)

    def forward_fused(self, nodes: jax.Array, embedding_table: jax.Array) -> jax.Array:
        # Encoder stand-in (table lookup) fused with the classifier matmul.
        return supervised_graphsage_scores_fused(nodes, embedding_table, self.weight)


if __name__ == "__main__":
    key = jax.random.PRNGKey(0)
    k_w, k_tab = jax.random.split(key)

    num_nodes = 16      # batch of node ids
    total_nodes = 64    # size of the synthetic graph
    embed_dim = 128     # enc.embed_dim
    num_classes = 7

    model = SupervisedGraphSage(num_classes, embed_dim, k_w)

    # Deterministic encoder stand-in: enc(nodes) == embedding_table[nodes]
    embedding_table = jax.random.normal(
        k_tab, (total_nodes, embed_dim), dtype=jnp.float32
    )
    nodes = (jnp.arange(num_nodes, dtype=jnp.int32) * 3) % total_nodes
    embeds = embedding_table[nodes]          # plain-JAX glue (gather)

    ref = embeds @ model.weight

    # Path 1: tiled matmul kernel on precomputed embeddings (no padding,
    # no output slice; 2 row tiles so both v7x TCs would be used).
    scores = model.forward(embeds)
    jax.block_until_ready(scores)
    assert scores.shape == (num_nodes, num_classes)
    assert jnp.allclose(scores, ref, atol=1e-5, rtol=1e-5)

    # Path 2: fused gather + matmul kernel (aggregated DMA wait, double-
    # buffered gather; embeds never materialized in HBM).
    scores_fused = model.forward_fused(nodes, embedding_table)
    jax.block_until_ready(scores_fused)
    assert scores_fused.shape == (num_nodes, num_classes)
    assert jnp.allclose(scores_fused, ref, atol=1e-5, rtol=1e-5)

    print("KERNEL_OK")
</pallas_src>

<mosaic_0001>
module attributes {stable_mosaic.version = 11 : i64} {
  func.func @_score_kernel(%arg0: i32, %arg1: memref<8x128xf32, #tpu.memory_space<vmem>>, %arg2: memref<128x7xf32, #tpu.memory_space<vmem>>, %arg3: memref<8x7xf32, #tpu.memory_space<vmem>>) attributes {dimension_semantics = [#tpu.dimension_semantics<parallel>], iteration_bounds = array<i64: 2>, scalar_prefetch = 0 : i64, scratch_operands = 0 : i64, tpu.core_type = #tpu.core_type<tc>, window_params = [{transform_indices = @transform_0, window_bounds = array<i64: 8, 128>}, {pipeline_mode = #tpu.pipeline_mode<synchronous>, transform_indices = @transform_1, window_bounds = array<i64: 128, 7>}, {transform_indices = @transform_2, window_bounds = array<i64: 8, 7>}]} {
    %c0 = arith.constant 0 : index
    %c0_0 = arith.constant 0 : index
    %0 = vector.load %arg1[%c0, %c0_0] : memref<8x128xf32, #tpu.memory_space<vmem>>, vector<8x128xf32>
    %c0_1 = arith.constant 0 : index
    %c0_2 = arith.constant 0 : index
    %1 = vector.load %arg2[%c0_1, %c0_2] : memref<128x7xf32, #tpu.memory_space<vmem>>, vector<128x7xf32>
    %cst = arith.constant dense<0.000000e+00> : vector<8x7xf32>
    %2 = tpu.matmul %0, %1, %cst {dimension_numbers = #tpu.dot_dimension_numbers<[1], [0], [0], [1], [0, 0, 1, 1], [], []>} : vector<8x128xf32>, vector<128x7xf32>, vector<8x7xf32> -> vector<8x7xf32>
    %c0_3 = arith.constant 0 : index
    %c0_4 = arith.constant 0 : index
    %3 = vector.load %arg3[%c0_3, %c0_4] : memref<8x7xf32, #tpu.memory_space<vmem>>, vector<8x7xf32>
    tpu.vector_store %arg3[%c0_3, %c0_4], %2 {strides = array<i32>} : memref<8x7xf32, #tpu.memory_space<vmem>>, vector<8x7xf32>,
    return
  }
  func.func @transform_0(%arg0: i32) -> (i32, i32) {
    %c0_i32 = arith.constant 0 : i32
    %c0_i32_0 = arith.constant 0 : i32
    return %arg0, %c0_i32 : i32, i32
  }
  func.func @transform_1(%arg0: i32) -> (i32, i32) {
    %c0_i32 = arith.constant 0 : i32
    %c0_i32_0 = arith.constant 0 : i32
    %c0_i32_1 = arith.constant 0 : i32
    return %c0_i32, %c0_i32_0 : i32, i32
  }
  func.func @transform_2(%arg0: i32) -> (i32, i32) {
    %c0_i32 = arith.constant 0 : i32
    %c0_i32_0 = arith.constant 0 : i32
    return %arg0, %c0_i32 : i32, i32
  }
}

</mosaic_0001>

<bundles_post_ra>
// kernel: tpu_custom_call.1
= control target key start
LH: loop header
LB: loop body
LE: loop exit
PB: predicated region body
PF: predicated region fallthrough
CT: control target
= control target key end

     0   :  { %s377_s9 = smov 0   ;;  %s446_s0 = inlined_call_operand.vmem [shape: f32[16,128], index: 0, kind: input, shape index: {}]   ;;  %s447_s1 = inlined_call_operand.vmem [shape: f32[128,7], index: 1, kind: input, shape index: {}]   ;;  %s448_s2 = inlined_call_operand.vmem [shape: f32[16,7], index: 2, kind: output, shape index: {}]  }
   0x1 LB: > { %s281_s10 = sadd.s32 4294967295, %s358_s9   ;;  %p285_p0 = scmp.ge.s32.totalorder %s358_s9, 1  ;;  %s358_s9 = sphi %s377_s9, %s12_s9  }
   0x2   : > { %p111_p1 = scmp.lt.s32.totalorder %s358_s9, 3 }
   0x4   : > { %p112_p2 = pnand %p285_p0, %p111_p1 }
   0x5   : > { %p131_p3 = scmp.lt.s32.totalorder (!%p112_p2), %s281_s10, 1 }
   0x6   : > { %115 = sbr.rel (%p112_p2) target bundleno = 239 (0xef), region = 28 }
   0xb   : > { %v155_v0 = vld [vmem:[%s447_s1 + $0x78] sm:$0xff]  ;;  %v360_v1 = vmov 0.0   ;;  %v154_v2 = vld [vmem:[%s447_s1 + $0x70] sm:$0xff]  ;;  %vm361_vm0 = vmmov 0   ;;  %v153_v3 = vld [vmem:[%s447_s1 + $0x68] sm:$0xff]  ;;  %s450_s10 = smov (!%p131_p3, %s281_s10), 1 }
   0xc   : > { %307 = vmatprep.subr.mxu0 %v360_v1  ;;  %339 = vmatprep.mubr.msk.f32.mxu0 %vm361_vm0, %v360_v1  ;;  %v152_v4 = vld [vmem:[%s447_s1 + $0x60] sm:$0xff]  ;;  %v151_v5 = vld [vmem:[%s447_s1 + $0x58] sm:$0xff]  ;;  %v150_v6 = vld [vmem:[%s447_s1 + $0x50] sm:$0xff]  ;;  %s286_s11 = sshll.u32 %s450_s10, 3  ;;  %vm226_vm1 = vcmask 56320  }
   0xd   : > { %308 = vmatpush3.msra.mxu0 %v155_v0  ;;  %v149_v7 = vld [vmem:[%s447_s1 + $0x48] sm:$0xff]  ;;  %v148_v8 = vld [vmem:[%s447_s1 + $0x40] sm:$0xff]  ;;  %v147_v9 = vld [vmem:[%s447_s1 + $0x38] sm:$0xff]  ;;  %s134_s18 = scalar_lea.vmem %s446_s0, %s286_s11  ;;  %s138_s22 = scalar_lea.vmem %s448_s2, %s286_s11 }
   0xe   : > { %309 = vmatprep.subr.mxu0 %v360_v1  ;;  %v146_v10 = vld [vmem:[%s447_s1 + $0x30] sm:$0xff]  ;;  %v145_v11 = vld [vmem:[%s447_s1 + $0x28] sm:$0xff]  ;;  %v144_v12 = vld [vmem:[%s447_s1 + $0x20] sm:$0xff] }
   0xf   : > { %310 = vmatpush3.msra.mxu0 %v154_v2  ;;  %v143_v13 = vld [vmem:[%s447_s1 + $0x18] sm:$0xff]  ;;  %v142_v14 = vld [vmem:[%s447_s1 + $0x10] sm:$0xff]  ;;  %v141_v15 = vld [vmem:[%s447_s1 + $0x8] sm:$0xff] }
  0x10   : > { %311 = vmatprep.subr.mxu0 %v360_v1  ;;  %v140_v16 = vld [vmem:[%s447_s1] sm:$0xff] }
  0x11   : > { %312 = vmatpush3.msra.mxu0 %v153_v3  ;;  %v139_v17 = vld [vmem:[%s134_s18] sm:$0xff] }
  0x12   : > { %313 = vmatprep.subr.mxu0 %v360_v1 }
  0x13   : > { %314 = vmatpush3.msra.mxu0 %v152_v4 }
  0x14   : > { %315 = vmatprep.subr.mxu0 %v360_v1 }
  0x15   : > { %316 = vmatpush3.msra.mxu0 %v151_v5 }
  0x16   : > { %317 = vmatprep.subr.mxu0 %v360_v1 }
  0x17   : > { %318 = vmatpush3.msra.mxu0 %v150_v6 }
  0x18   : > { %319 = vmatprep.subr.mxu0 %v360_v1 }
  0x19   : > { %320 = vmatpush3.msra.mxu0 %v149_v7 }
  0x1a   : > { %321 = vmatprep.subr.mxu0 %v360_v1 }
  0x1b   : > { %322 = vmatpush3.msra.mxu0 %v148_v8 }
  0x1c   : > { %323 = vmatprep.subr.mxu0 %v360_v1 }
  0x1d   : > { %324 = vmatpush3.msra.mxu0 %v147_v9 }
  0x1e   : > { %325 = vmatprep.subr.mxu0 %v360_v1 }
  0x1f   : > { %326 = vmatpush3.msra.mxu0 %v146_v10 }
  0x20   : > { %327 = vmatprep.subr.mxu0 %v360_v1 }
  0x21   : > { %328 = vmatpush3.msra.mxu0 %v145_v11 }
  0x22   : > { %329 = vmatprep.subr.mxu0 %v360_v1 }
  0x23   : > { %330 = vmatpush3.msra.mxu0 %v144_v12 }
  0x24   : > { %331 = vmatprep.subr.mxu0 %v360_v1 }
  0x25   : > { %332 = vmatpush3.msra.mxu0 %v143_v13 }
  0x26   : > { %333 = vmatprep.subr.mxu0 %v360_v1 }
  0x27   : > { %334 = vmatpush3.msra.mxu0 %v142_v14 }
  0x28   : > { %335 = vmatprep.subr.mxu0 %v360_v1 }
  0x29   : > { %336 = vmatpush3.msra.mxu0 %v141_v15 }
  0x2a   : > { %337 = vmatprep.subr.mxu0 %v360_v1 }
  0x2b   : > { %338 = vmatpush3.msra.mxu0 %v140_v16 }
  0x2c   : > { %340 = vmatmul.mubr.f32.vlgmr.msra.gmra.mxu0 %v139_v17 }
  0xec   : > { %v222_v18 = vpop.f32.mrf.mxu0 }
  0xed   : > { %227 = vst.msk [vmem:[%s138_s22] sm:$0xff] %vm226_vm1, %v222_v18 }
  0xee   : > { %v341_v19 = vpop.f32.mrf.mxu0 }
  0xef PF: > { %s12_s9 = sadd.s32 1, %s358_s9  }
  0xf0   : > { %p9_p4 = scmp.ge.s32.totalorder %s12_s9, 4  }
  0xf2   :  { %11 = sbr.rel (!%p9_p4) target bundleno = 1 (0x1), region = 58 }

</bundles_post_ra>
